<compile_context>
chip_gen: v6e
topology: v6e:2x2x1
jax: 0.10.0
libtpu: 0.0.40
codegen_flags: <defaults>
</compile_context>

<pallas_src>
import jax
import jax.numpy as jnp
from jax.experimental import pallas as pl
from jax.experimental.pallas import tpu as pltpu

_LANE = 128
_MIB = 1024 * 1024


def _round_up(a, m):
    return ((a + m - 1) // m) * m


def _vmem_capacity_bytes():
    """Physical per-core VMEM, with a conservative fallback (v7x per-TC size)."""
    try:
        return int(pltpu.get_tpu_info().vmem_capacity_bytes)
    except Exception:  # older jax / CPU trace
        return 64 * _MIB


# ----------------------------------------------------------------------------
# Kernel A: gating network + stacked LoRA-"A":  midg = (x @ A_all) * gate_r
# ----------------------------------------------------------------------------
def _gate_mid_kernel(x_ref, wg1_ref, bg1_ref, wg2_ref, bg2_ref,
                     aall_ref, expand_ref, midg_ref):
    x = x_ref[...]
    # gating: Linear -> ReLU -> Linear -> Softmax (f32 accumulation, f32 biases)
    h = jnp.dot(x, wg1_ref[...], preferred_element_type=jnp.float32)
    h = jnp.maximum(h + bg1_ref[...], 0.0)
    logits = jnp.dot(h.astype(wg2_ref.dtype), wg2_ref[...],
                     preferred_element_type=jnp.float32) + bg2_ref[...]
    m = jnp.max(logits, axis=-1, keepdims=True)
    e = jnp.exp(logits - m)
    gate = e * pl.reciprocal(jnp.sum(e, axis=-1, keepdims=True))  # exact softmax
    # Expand per-expert gates to per-rank columns with one tiny 0/1 matmul
    # (padded experts/ranks contribute exactly zero).
    gate_r = jnp.dot(gate, expand_ref[...], preferred_element_type=jnp.float32)
    # Stacked LoRA "A" matmul for all experts at once, gated, stored in compute dtype.
    mid = jnp.dot(x, aall_ref[...], preferred_element_type=jnp.float32)
    midg_ref[...] = (mid * gate_r).astype(midg_ref.dtype)


# ----------------------------------------------------------------------------
# Kernel B: out = x @ w_eff + b_lin + midg @ B_all
# ----------------------------------------------------------------------------
def _main_kernel(x_ref, w_ref, blin_ref, midg_ref, ball_ref, o_ref):
    acc = jnp.dot(x_ref[...], w_ref[...], preferred_element_type=jnp.float32)
    acc = acc + blin_ref[...]
    acc = acc + jnp.dot(midg_ref[...], ball_ref[...],
                        preferred_element_type=jnp.float32)
    o_ref[...] = acc.astype(o_ref.dtype)


# ----------------------------------------------------------------------------
# One-time (per weight update) host-side folding / padding / casting.
# ----------------------------------------------------------------------------
def prepare_params(params, *, scale_g, scale_l,
                   compute_dtype=jnp.bfloat16, tn=512):
    """Fold + pad + cast weights ONCE; reuse the result for every forward call."""
    f32 = jnp.float32
    cd = compute_dtype
    D_in, D_out = params["w_lin"].shape
    H = params["w_g1"].shape[1]
    E, _, r_l = params["wa_l"].shape
    R = E * r_l

    D_in_pad = _round_up(D_in, _LANE)
    H_pad = _round_up(H, _LANE)
    E_pad = _round_up(E, _LANE)
    R_pad = _round_up(R, _LANE)

    # D_out tile: never shrink below the request for divisibility; pad D_out instead.
    tn = max(_LANE, min(_round_up(tn, _LANE), _round_up(D_out, _LANE)))
    D_out_pad = _round_up(D_out, tn)

    def pad2(a, rows, cols):
        return jnp.pad(a, ((0, rows - a.shape[0]), (0, cols - a.shape[1])))

    # Global LoRA folded into the base weight (f32 accumulation, single cast).
    w_eff = params["w_lin"].astype(f32) + 0.5 * scale_g * (
        params["wa_g"].astype(f32) @ params["wb_g"].astype(f32))
    # Stacked expert LoRA:  A_all (D_in, E*r),  B_all (E*r, D_out) with 0.5*scale_l folded.
    a_all = params["wa_l"].astype(f32).transpose(1, 0, 2).reshape(D_in, R)
    b_all = (0.5 * scale_l) * params["wb_l"].astype(f32).reshape(R, D_out)

    # Padded expert logits get a very negative f32 bias -> softmax weight exactly 0.
    bg2 = jnp.full((1, E_pad), -1e30, f32).at[:, :E].set(
        params["b_g2"].astype(f32).reshape(1, E))
    # 0/1 expansion matrix: expand[e, e*r + j] = 1
    idx = jnp.arange(R)
    expand = jnp.zeros((E_pad, R_pad), f32).at[idx // r_l, idx].set(1.0)

    return {
        "dims": (D_in, D_out, D_in_pad, H_pad, E_pad, R_pad, D_out_pad, tn),
        "dtype": cd,
        "w":     pad2(w_eff, D_in_pad, D_out_pad).astype(cd),
        "b_lin": pad2(params["b_lin"].astype(f32).reshape(1, D_out), 1, D_out_pad),
        "w_g1":  pad2(params["w_g1"].astype(f32), D_in_pad, H_pad).astype(cd),
        "b_g1":  pad2(params["b_g1"].astype(f32).reshape(1, H), 1, H_pad),
        "w_g2":  pad2(params["w_g2"].astype(f32), H_pad, E_pad).astype(cd),
        "b_g2":  bg2,
        "a_all": pad2(a_all, D_in_pad, R_pad).astype(cd),
        "expand": expand,
        "b_all": pad2(b_all, R_pad, D_out_pad).astype(cd),
    }


# ----------------------------------------------------------------------------
# Forward
# ----------------------------------------------------------------------------
def linear_with_lora_combined_moe(x, prepped, *, tile=512, out_dtype=jnp.float32):
    """x: (..., D_in). Returns (..., D_out) in out_dtype (use bf16 on v5e if tolerated)."""
    cd = prepped["dtype"]
    (D_in, D_out, D_in_pad, H_pad, E_pad, R_pad, D_out_pad, tn) = prepped["dims"]

    lead = x.shape[:-1]
    x2 = x.reshape(-1, D_in)
    N = x2.shape[0]

    # Row tile: clamp to the problem, keep a multiple of 16 (bf16 sublane packing).
    tile = max(16, min(_round_up(tile, 16), _round_up(N, 16)))

    # ---------------- VMEM budgeting (per-generation, derived not hard-coded) -----
    cap = _vmem_capacity_bytes()
    budget = (cap * 3) // 4                    # ~48 MiB on v7x, ~96 MiB on v5e/v6e
    cdb = jnp.dtype(cd).itemsize
    ob = jnp.dtype(out_dtype).itemsize

    def main_fp(t, n_):
        # double-buffered blocks of the main kernel
        return 2 * (t * D_in_pad * cdb          # x
                    + D_in_pad * n_ * cdb       # w_eff
                    + 8 * n_ * 4                # b_lin (padded to 8 sublanes)
                    + t * R_pad * cdb           # midg
                    + R_pad * n_ * cdb          # B_all
                    + t * n_ * ob)              # out

    while main_fp(tile, tn) > budget and tile > 16:
        tile = max(16, _round_up(tile // 2, 16))
    while main_fp(tile, tn) > budget and tn > _LANE:
        smaller = [d for d in range(tn - _LANE, _LANE - 1, -_LANE)
                   if D_out_pad % d == 0]
        if not smaller:
            break
        tn = smaller[0]

    N_pad = _round_up(N, tile)
    x_p = jnp.pad(x2.astype(cd), ((0, N_pad - N), (0, D_in_pad - D_in)))

    # ---------------- Kernel A: gating + gated stacked-A -------------------------
    gate_fp = 2 * (tile * D_in_pad * cdb + D_in_pad * H_pad * cdb + 8 * H_pad * 4
                   + H_pad * E_pad * cdb + 8 * E_pad * 4 + D_in_pad * R_pad * cdb
                   + E_pad * R_pad * 4 + tile * R_pad * cdb)
    gate_cost = pl.CostEstimate(
        flops=int(2 * N_pad * (D_in_pad * H_pad + H_pad * E_pad
                               + E_pad * R_pad + D_in_pad * R_pad)),
        transcendentals=int(N_pad * E_pad),
        bytes_accessed=int(N_pad * D_in_pad * cdb + D_in_pad * (H_pad + R_pad) * cdb
                           + H_pad * E_pad * cdb + N_pad * R_pad * cdb))

    midg = pl.pallas_call(
        _gate_mid_kernel,
        out_shape=jax.ShapeDtypeStruct((N_pad, R_pad), cd),
        grid_spec=pltpu.PrefetchScalarGridSpec(
            num_scalar_prefetch=0,
            grid=(N_pad // tile,),
            in_specs=[
                pl.BlockSpec((tile, D_in_pad), lambda i: (i, 0)),    # x
                pl.BlockSpec((D_in_pad, H_pad), lambda i: (0, 0)),   # w_g1
                pl.BlockSpec((1, H_pad), lambda i: (0, 0)),          # b_g1
                pl.BlockSpec((H_pad, E_pad), lambda i: (0, 0)),      # w_g2
                pl.BlockSpec((1, E_pad), lambda i: (0, 0)),          # b_g2 (f32)
                pl.BlockSpec((D_in_pad, R_pad), lambda i: (0, 0)),   # A_all
                pl.BlockSpec((E_pad, R_pad), lambda i: (0, 0)),      # expand
            ],
            out_specs=pl.BlockSpec((tile, R_pad), lambda i: (i, 0)),
        ),
        compiler_params=pltpu.CompilerParams(
            dimension_semantics=("parallel",),
            vmem_limit_bytes=int(min(budget, max(32 * _MIB, int(1.5 * gate_fp) + 8 * _MIB))),
        ),
        cost_estimate=gate_cost,
    )(x_p, prepped["w_g1"], prepped["b_g1"], prepped["w_g2"], prepped["b_g2"],
      prepped["a_all"], prepped["expand"])

    # ---------------- Kernel B: main fused linear --------------------------------
    gi = N_pad // tile
    gj = D_out_pad // tn
    # Re-stream whichever side is cheaper:
    #   rows outer -> weights re-streamed gi times; cols outer -> activations gj times.
    w_bytes = (D_in_pad + R_pad) * D_out_pad * cdb
    x_bytes = N_pad * (D_in_pad + R_pad) * cdb
    rows_outer = (gi * w_bytes + x_bytes) <= (gj * x_bytes + w_bytes)

    if rows_outer:
        grid = (gi, gj)
        xm = lambda i, j: (i, 0)
        wm = lambda i, j: (0, j)
        bm = lambda i, j: (0, j)
        mm = lambda i, j: (i, 0)
        am = lambda i, j: (0, j)
        om = lambda i, j: (i, j)
        traffic = gi * w_bytes + x_bytes
    else:
        grid = (gj, gi)
        xm = lambda j, i: (i, 0)
        wm = lambda j, i: (0, j)
        bm = lambda j, i: (0, j)
        mm = lambda j, i: (i, 0)
        am = lambda j, i: (0, j)
        om = lambda j, i: (i, j)
        traffic = gj * x_bytes + w_bytes

    main_cost = pl.CostEstimate(
        flops=int(2 * N_pad * (D_in_pad + R_pad) * D_out_pad),
        transcendentals=0,
        bytes_accessed=int(traffic + N_pad * D_out_pad * ob + 8 * D_out_pad * 4))

    out = pl.pallas_call(
        _main_kernel,
        out_shape=jax.ShapeDtypeStruct((N_pad, D_out_pad), out_dtype),
        grid_spec=pltpu.PrefetchScalarGridSpec(
            num_scalar_prefetch=0,
            grid=grid,
            in_specs=[
                pl.BlockSpec((tile, D_in_pad), xm),   # x
                pl.BlockSpec((D_in_pad, tn), wm),     # w_eff
                pl.BlockSpec((1, tn), bm),            # b_lin (f32)
                pl.BlockSpec((tile, R_pad), mm),      # midg
                pl.BlockSpec((R_pad, tn), am),        # B_all
            ],
            out_specs=pl.BlockSpec((tile, tn), om),
        ),
        compiler_params=pltpu.CompilerParams(
            dimension_semantics=("parallel", "parallel"),
            vmem_limit_bytes=int(min(budget,
                                     max(32 * _MIB, int(1.5 * main_fp(tile, tn)) + 8 * _MIB))),
        ),
        cost_estimate=main_cost,
    )(x_p, prepped["w"], prepped["b_lin"], midg, prepped["b_all"])

    return out[:N, :D_out].reshape(*lead, D_out)


# ----------------------------------------------------------------------------
# Pure-JAX reference (mirrors the PyTorch module's eval forward)
# ----------------------------------------------------------------------------
def _reference(x, params, scale_g, scale_l):
    base = x @ params["w_lin"] + params["b_lin"]
    h = jnp.maximum(x @ params["w_g1"] + params["b_g1"], 0.0)
    gate = jax.nn.softmax(h @ params["w_g2"] + params["b_g2"], axis=-1)
    glob = scale_g * (x @ params["wa_g"] @ params["wb_g"])
    local = jnp.zeros_like(base)
    for i in range(params["wa_l"].shape[0]):
        eo = scale_l * (x @ params["wa_l"][i] @ params["wb_l"][i])
        local = local + gate[..., i:i + 1] * eo
    return base + 0.5 * glob + 0.5 * local


if __name__ == "__main__":
    # Small, deterministic problem consistent with the module's __init__.
    B, S = 2, 8                      # batch, sequence
    D_in, D_out = 32, 32             # linear.in_features / out_features
    rank_g, alpha_g = 4, 8           # global LoRA
    rank_l, alpha_l = 4, 8           # local LoRA experts
    E = 2                            # num_local_experts
    moe_hidden_scale = 2.0
    H = int(D_in // moe_hidden_scale)  # gating hidden dim = 16

    scale_g = alpha_g / rank_g
    scale_l = alpha_l / rank_l

    key = jax.random.PRNGKey(0)
    keys = jax.random.split(key, 12)

    # NOTE: PyTorch inits W_b to zeros (LoRA starts as no-op); nonzero randoms here
    # so the LoRA/MoE paths are actually exercised.
    params = {
        "w_lin": jax.random.normal(keys[0], (D_in, D_out), jnp.float32) * 0.05,
        "b_lin": jax.random.normal(keys[1], (1, D_out), jnp.float32) * 0.05,
        "w_g1":  jax.random.normal(keys[2], (D_in, H), jnp.float32) * 0.05,
        "b_g1":  jax.random.normal(keys[3], (1, H), jnp.float32) * 0.05,
        "w_g2":  jax.random.normal(keys[4], (H, E), jnp.float32) * 0.05,
        "b_g2":  jax.random.normal(keys[5], (1, E), jnp.float32) * 0.05,
        "wa_g":  jax.random.normal(keys[6], (D_in, rank_g), jnp.float32)
                 * (1.0 / jnp.sqrt(rank_g)),
        "wb_g":  jax.random.normal(keys[7], (rank_g, D_out), jnp.float32) * 0.05,
        "wa_l":  jax.random.normal(keys[8], (E, D_in, rank_l), jnp.float32)
                 * (1.0 / jnp.sqrt(rank_l)),
        "wb_l":  jax.random.normal(keys[9], (E, rank_l, D_out), jnp.float32) * 0.05,
    }

    x = jax.random.normal(keys[10], (B, S, D_in), jnp.float32)
    x_flat = x.reshape(B * S, D_in)

    # One-time host-side prep (hoisted off the forward path); done once per dtype here.
    prepped_f32 = prepare_params(params, scale_g=scale_g, scale_l=scale_l,
                                 compute_dtype=jnp.float32)
    prepped_bf16 = prepare_params(params, scale_g=scale_g, scale_l=scale_l,
                                  compute_dtype=jnp.bfloat16)

    # ---- f32 path (original (B, S, D) layout) ------------------------------
    out_f32 = linear_with_lora_combined_moe(x, prepped_f32)
    out_f32 = jax.block_until_ready(out_f32)
    ref = _reference(x, params, scale_g, scale_l)
    assert out_f32.shape == (B, S, D_out)
    assert jnp.allclose(out_f32, ref, atol=2e-3, rtol=2e-3), "f32 mismatch vs reference"

    # ---- bf16 path + ragged row count (exercises padding) ------------------
    x_ragged = x_flat[:13]
    out_bf16 = linear_with_lora_combined_moe(x_ragged, prepped_bf16)
    out_bf16 = jax.block_until_ready(out_bf16)
    ref_ragged = _reference(x_ragged, params, scale_g, scale_l)
    assert out_bf16.shape == (13, D_out)
    assert jnp.allclose(out_bf16, ref_ragged, atol=5e-2, rtol=5e-2), \
        "bf16 mismatch vs reference"

    print("KERNEL_OK")
</pallas_src>

<mosaic_0001>
module attributes {stable_mosaic.version = 11 : i64} {
  func.func @_gate_mid_kernel(%arg0: i32, %arg1: memref<16x128xf32, #tpu.memory_space<vmem>>, %arg2: memref<128x128xf32, #tpu.memory_space<vmem>>, %arg3: memref<1x128xf32, #tpu.memory_space<vmem>>, %arg4: memref<128x128xf32, #tpu.memory_space<vmem>>, %arg5: memref<1x128xf32, #tpu.memory_space<vmem>>, %arg6: memref<128x128xf32, #tpu.memory_space<vmem>>, %arg7: memref<128x128xf32, #tpu.memory_space<vmem>>, %arg8: memref<16x128xf32, #tpu.memory_space<vmem>>) attributes {dimension_semantics = [#tpu.dimension_semantics<parallel>], iteration_bounds = array<i64: 1>, scalar_prefetch = 0 : i64, scratch_operands = 0 : i64, tpu.core_type = #tpu.core_type<tc>, window_params = [{transform_indices = @transform_0, window_bounds = array<i64: 16, 128>}, {pipeline_mode = #tpu.pipeline_mode<synchronous>, transform_indices = @transform_1, window_bounds = array<i64: 128, 128>}, {pipeline_mode = #tpu.pipeline_mode<synchronous>, transform_indices = @transform_2, window_bounds = array<i64: 1, 128>}, {pipeline_mode = #tpu.pipeline_mode<synchronous>, transform_indices = @transform_3, window_bounds = array<i64: 128, 128>}, {pipeline_mode = #tpu.pipeline_mode<synchronous>, transform_indices = @transform_4, window_bounds = array<i64: 1, 128>}, {pipeline_mode = #tpu.pipeline_mode<synchronous>, transform_indices = @transform_5, window_bounds = array<i64: 128, 128>}, {pipeline_mode = #tpu.pipeline_mode<synchronous>, transform_indices = @transform_6, window_bounds = array<i64: 128, 128>}, {transform_indices = @transform_7, window_bounds = array<i64: 16, 128>}]} {
    %c0 = arith.constant 0 : index
    %c0_0 = arith.constant 0 : index
    %0 = vector.load %arg1[%c0, %c0_0] : memref<16x128xf32, #tpu.memory_space<vmem>>, vector<16x128xf32>
    %c0_1 = arith.constant 0 : index
    %c0_2 = arith.constant 0 : index
    %1 = vector.load %arg2[%c0_1, %c0_2] : memref<128x128xf32, #tpu.memory_space<vmem>>, vector<128x128xf32>
    %cst = arith.constant dense<0.000000e+00> : vector<16x128xf32>
    %2 = tpu.matmul %0, %1, %cst {dimension_numbers = #tpu.dot_dimension_numbers<[1], [0], [0], [1], [0, 0, 1, 1], [], []>} : vector<16x128xf32>, vector<128x128xf32>, vector<16x128xf32> -> vector<16x128xf32>
    %c0_3 = arith.constant 0 : index
    %c0_4 = arith.constant 0 : index
    %3 = vector.load %arg3[%c0_3, %c0_4] : memref<1x128xf32, #tpu.memory_space<vmem>>, vector<1x128xf32>
    %4 = vector.broadcast %3 : vector<1x128xf32> to vector<16x128xf32>
    %5 = arith.addf %2, %4 : vector<16x128xf32>
    %cst_5 = arith.constant 0.000000e+00 : f32
    %6 = vector.broadcast %cst_5 : f32 to vector<16x128xf32>
    %7 = arith.maximumf %5, %6 : vector<16x128xf32>
    %c0_6 = arith.constant 0 : index
    %c0_7 = arith.constant 0 : index
    %8 = vector.load %arg4[%c0_6, %c0_7] : memref<128x128xf32, #tpu.memory_space<vmem>>, vector<128x128xf32>
    %cst_8 = arith.constant dense<0.000000e+00> : vector<16x128xf32>
    %9 = tpu.matmul %7, %8, %cst_8 {dimension_numbers = #tpu.dot_dimension_numbers<[1], [0], [0], [1], [0, 0, 1, 1], [], []>} : vector<16x128xf32>, vector<128x128xf32>, vector<16x128xf32> -> vector<16x128xf32>
    %c0_9 = arith.constant 0 : index
    %c0_10 = arith.constant 0 : index
    %10 = vector.load %arg5[%c0_9, %c0_10] : memref<1x128xf32, #tpu.memory_space<vmem>>, vector<1x128xf32>
    %11 = vector.broadcast %10 : vector<1x128xf32> to vector<16x128xf32>
    %12 = arith.addf %9, %11 : vector<16x128xf32>
    %cst_11 = arith.constant dense<0xFF800000> : vector<16xf32>
    %13 = vector.multi_reduction <maximumf>, %12, %cst_11 [1] : vector<16x128xf32> to vector<16xf32>
    %14 = vector.shape_cast %13 : vector<16xf32> to vector<16x1xf32>
    %15 = vector.broadcast %14 : vector<16x1xf32> to vector<16x128xf32>
    %16 = arith.subf %12, %15 : vector<16x128xf32>
    %17 = math.exp %16 : vector<16x128xf32>
    %cst_12 = arith.constant dense<0.000000e+00> : vector<16xf32>
    %18 = vector.multi_reduction <add>, %17, %cst_12 [1] : vector<16x128xf32> to vector<16xf32>
    %19 = vector.shape_cast %18 : vector<16xf32> to vector<16x1xf32>
    %20 = tpu.reciprocal %19 : vector<16x1xf32> -> vector<16x1xf32>
    %21 = vector.broadcast %20 : vector<16x1xf32> to vector<16x128xf32>
    %22 = arith.mulf %17, %21 : vector<16x128xf32>
    %c0_13 = arith.constant 0 : index
    %c0_14 = arith.constant 0 : index
    %23 = vector.load %arg7[%c0_13, %c0_14] : memref<128x128xf32, #tpu.memory_space<vmem>>, vector<128x128xf32>
    %cst_15 = arith.constant dense<0.000000e+00> : vector<16x128xf32>
    %24 = tpu.matmul %22, %23, %cst_15 {dimension_numbers = #tpu.dot_dimension_numbers<[1], [0], [0], [1], [0, 0, 1, 1], [], []>} : vector<16x128xf32>, vector<128x128xf32>, vector<16x128xf32> -> vector<16x128xf32>
    %c0_16 = arith.constant 0 : index
    %c0_17 = arith.constant 0 : index
    %25 = vector.load %arg6[%c0_16, %c0_17] : memref<128x128xf32, #tpu.memory_space<vmem>>, vector<128x128xf32>
    %cst_18 = arith.constant dense<0.000000e+00> : vector<16x128xf32>
    %26 = tpu.matmul %0, %25, %cst_18 {dimension_numbers = #tpu.dot_dimension_numbers<[1], [0], [0], [1], [0, 0, 1, 1], [], []>} : vector<16x128xf32>, vector<128x128xf32>, vector<16x128xf32> -> vector<16x128xf32>
    %27 = arith.mulf %26, %24 : vector<16x128xf32>
    %c0_19 = arith.constant 0 : index
    %c0_20 = arith.constant 0 : index
    %28 = vector.load %arg8[%c0_19, %c0_20] : memref<16x128xf32, #tpu.memory_space<vmem>>, vector<16x128xf32>
    tpu.vector_store %arg8[%c0_19, %c0_20], %27 {strides = array<i32>} : memref<16x128xf32, #tpu.memory_space<vmem>>, vector<16x128xf32>,
    return
  }
  func.func @transform_0(%arg0: i32) -> (i32, i32) {
    %c0_i32 = arith.constant 0 : i32
    %c0_i32_0 = arith.constant 0 : i32
    return %arg0, %c0_i32 : i32, i32
  }
  func.func @transform_1(%arg0: i32) -> (i32, i32) {
    %c0_i32 = arith.constant 0 : i32
    %c0_i32_0 = arith.constant 0 : i32
    %c0_i32_1 = arith.constant 0 : i32
    return %c0_i32, %c0_i32_0 : i32, i32
  }
  func.func @transform_2(%arg0: i32) -> (i32, i32) {
    %c0_i32 = arith.constant 0 : i32
    %c0_i32_0 = arith.constant 0 : i32
    %c0_i32_1 = arith.constant 0 : i32
    return %c0_i32, %c0_i32_0 : i32, i32
  }
  func.func @transform_3(%arg0: i32) -> (i32, i32) {
    %c0_i32 = arith.constant 0 : i32
    %c0_i32_0 = arith.constant 0 : i32
    %c0_i32_1 = arith.constant 0 : i32
    return %c0_i32, %c0_i32_0 : i32, i32
  }
  func.func @transform_4(%arg0: i32) -> (i32, i32) {
    %c0_i32 = arith.constant 0 : i32
    %c0_i32_0 = arith.constant 0 : i32
    %c0_i32_1 = arith.constant 0 : i32
    return %c0_i32, %c0_i32_0 : i32, i32
  }
  func.func @transform_5(%arg0: i32) -> (i32, i32) {
    %c0_i32 = arith.constant 0 : i32
    %c0_i32_0 = arith.constant 0 : i32
    %c0_i32_1 = arith.constant 0 : i32
    return %c0_i32, %c0_i32_0 : i32, i32
  }
  func.func @transform_6(%arg0: i32) -> (i32, i32) {
    %c0_i32 = arith.constant 0 : i32
    %c0_i32_0 = arith.constant 0 : i32
    %c0_i32_1 = arith.constant 0 : i32
    return %c0_i32, %c0_i32_0 : i32, i32
  }
  func.func @transform_7(%arg0: i32) -> (i32, i32) {
    %c0_i32 = arith.constant 0 : i32
    %c0_i32_0 = arith.constant 0 : i32
    return %arg0, %c0_i32 : i32, i32
  }
}

</mosaic_0001>

<bundles_post_ra>
// kernel: tpu_custom_call.1
= control target key start
LH: loop header
LB: loop body
LE: loop exit
PB: predicated region body
PF: predicated region fallthrough
CT: control target
= control target key end

     0   :  { %12 = vsyncpa [#allocation3], 0  ;;  %s982_s0 = inlined_call_operand.hbm [shape: f32[16,128], index: 0, kind: input, shape index: {}]   ;;  %s983_s1 = inlined_call_operand.hbm [shape: f32[128,128], index: 1, kind: input, shape index: {}]   ;;  %s984_s2 = inlined_call_operand.vmem [shape: f32[1,128], index: 2, kind: input, shape index: {}]   ;;  %s985_s3 = inlined_call_operand.hbm [shape: f32[128,128], index: 3, kind: input, shape index: {}]   ;;  %s986_s4 = inlined_call_operand.vmem [shape: f32[1,128], index: 4, kind: input, shape index: {}]   ;;  %s987_s5 = inlined_call_operand.hbm [shape: f32[128,128], index: 5, kind: input, shape index: {}]   ;;  %s988_s6 = inlined_call_operand.hbm [shape: f32[128,128], index: 6, kind: input, shape index: {}]   ;;  %s989_s7 = inlined_call_operand.hbm [shape: f32[16,128], index: 7, kind: output, shape index: {}]  }
   0x1   :  { %13 = vsyncpa [#allocation6], 0 }
   0x2   :  { %14 = vsyncpa [#allocation9], 0 }
   0x3   :  { %15 = vsyncpa [#allocation4], 0  ;;  %s876_s24 = smov [#allocation5]   ;;  %s877_s26 = smov [#allocation8]  }
   0x4   :  { %s33_s25 = sshll.u32 %s876_s24, 4  ;;  %s61_s27 = sshll.u32 %s877_s26, 4  ;;  %s34_s25 = int_to_ptr.vmem [resolvable:$true] %s33_s25  ;;  %s62_s27 = int_to_ptr.vmem [resolvable:$true] %s61_s27 }
   0x5   :  { %s756_s28 = scalar_lea.vmem %s34_s25, 2048  ;;  %p761_p1 = scmp.lt.s32.totalorder %s34_s25, %s34_s25 }
   0x6   :  { %p757_p0 = scmp.ne.s32.totalorder %s34_s25, %s756_s28  ;;  %p762_p2 = scmp.lt.s32.totalorder %s756_s28, %s756_s28 }
   0x8   :  { %p763_p3 = por %p762_p2, %p761_p1 }
   0xa   :  { %p764_p4 = pnand %p763_p3, %p757_p0 }
   0xc   :  { %767 = shalt.err (!%p764_p4)
}
   0xd   :  { %s878_s29 = smov 128   ;;  %s879_s30 = smov 8  }
   0xe   :  { %39 = dma.hbm_to_vmem [thread:$0]  %s983_s1, 2048, %s34_s25, [#allocation6], %s878_s29, %s878_s29, %s879_s30  }
   0xf   :  { %s776_s10 = scalar_lea.vmem %s62_s27, 2048  ;;  %p781_p6 = scmp.lt.s32.totalorder %s62_s27, %s62_s27 }
  0x10   :  { %p777_p5 = scmp.ne.s32.totalorder %s62_s27, %s776_s10  ;;  %p782_p7 = scmp.lt.s32.totalorder %s776_s10, %s776_s10 }
  0x12   :  { %p783_p8 = por %p782_p7, %p781_p6 }
  0x14   :  { %p784_p9 = pnand %p783_p8, %p777_p5 }
  0x16   :  { %787 = shalt.err (!%p784_p9)
}
  0x17   :  { %67 = dma.hbm_to_vmem [thread:$0]  %s987_s5, 2048, %s62_s27, [#allocation9], %s878_s29, %s878_s29, %s879_s30  }
  0x18   :  { %s880_s13 = smov [#allocation2]   ;;  %s881_s15 = smov [#allocation7]  }
  0x19   :  { %s21_s14 = sshll.u32 %s880_s13, 4  ;;  %s47_s16 = sshll.u32 %s881_s15, 4  ;;  %s22_s14 = int_to_ptr.vmem [resolvable:$true] %s21_s14  ;;  %s48_s16 = int_to_ptr.vmem [resolvable:$true] %s47_s16 }
  0x1a   :  { %s796_s1 = scalar_lea.vmem %s22_s14, 256  ;;  %p801_p11 = scmp.lt.s32.totalorder %s22_s14, %s22_s14 }
  0x1b   :  { %p797_p10 = scmp.ne.s32.totalorder %s22_s14, %s796_s1  ;;  %p802_p12 = scmp.lt.s32.totalorder %s796_s1, %s796_s1 }
  0x1d   :  { %p803_p13 = por %p802_p12, %p801_p11 }
  0x1f   :  { %p804_p0 = pnand %p803_p13, %p797_p10 }
  0x21   :  { %807 = shalt.err (!%p804_p0)
}
  0x22   :  { %27 = dma.hbm_to_vmem [thread:$0]  %s982_s0, 256, %s22_s14, [#allocation3], %s878_s29, %s878_s29, %s879_s30  }
  0x23   :  { %s816_s5 = scalar_lea.vmem %s48_s16, 2048  ;;  %p821_p2 = scmp.lt.s32.totalorder %s48_s16, %s48_s16 }
  0x24   :  { %p817_p1 = scmp.ne.s32.totalorder %s48_s16, %s816_s5  ;;  %p822_p3 = scmp.lt.s32.totalorder %s816_s5, %s816_s5 }
  0x26   :  { %p823_p4 = por %p822_p3, %p821_p2 }
  0x28   :  { %p824_p5 = pnand %p823_p4, %p817_p1 }
  0x2a   :  { %827 = shalt.err (!%p824_p5)
}
  0x2b   :  { %53 = dma.hbm_to_vmem [thread:$0]  %s985_s3, 2048, %s48_s16, [#allocation6], %s878_s29, %s878_s29, %s879_s30  }
  0x2c   :  { %s882_s21 = smov [#allocation10]  }
  0x2d   :  { %s73_s22 = sshll.u32 %s882_s21, 4  ;;  %s74_s22 = int_to_ptr.vmem [resolvable:$true] %s73_s22 }
  0x2e   :  { %s836_s23 = scalar_lea.vmem %s74_s22, 2048  ;;  %p841_p7 = scmp.lt.s32.totalorder %s74_s22, %s74_s22 }
  0x2f   :  { %p837_p6 = scmp.ne.s32.totalorder %s74_s22, %s836_s23  ;;  %p842_p8 = scmp.lt.s32.totalorder %s836_s23, %s836_s23 }
  0x31   :  { %p843_p9 = por %p842_p8, %p841_p7 }
  0x33   :  { %p844_p10 = pnand %p843_p9, %p837_p6 }
  0x35   :  { %847 = shalt.err (!%p844_p10)
}
  0x36   :  { %79 = dma.hbm_to_vmem [thread:$0]  %s988_s6, 2048, %s74_s22, [#allocation9], %s878_s29, %s878_s29, %s879_s30  }
  0x37   :  { %868 = dma.done.wait [#allocation3], 256  }
  0x38   :  { %869 = vsyncadd [#allocation3], 4294967040 }
  0x39   :  { %870 = dma.done.wait [#allocation6], 4096  }
  0x3a   :  { %871 = vsyncadd [#allocation6], 4294963200 }
  0x3b   :  { %872 = dma.done.wait [#allocation9], 4096  }
  0x3c   :  { %873 = vsyncadd [#allocation9], 4294963200  ;;  %v112_v0 = vld [vmem:[#allocation5 + $0x78] sm:$0xff]  ;;  %v111_v1 = vld [vmem:[#allocation5 + $0x70] sm:$0xff] }
  0x3d   :  { %592 = vmatprep.subr.mxu0 %v112_v0  ;;  %v110_v2 = vld [vmem:[#allocation5 + $0x68] sm:$0xff]  ;;  %v109_v3 = vld [vmem:[#allocation5 + $0x60] sm:$0xff]  ;;  %v954_v4 = vld [vmem:[#allocation2] sm:$0xff] }
  0x3e   :  { %593 = vmatpush3.msra.mxu0 %v112_v0  ;;  %v108_v5 = vld [vmem:[#allocation5 + $0x58] sm:$0xff]  ;;  %624 = vmatprep.mubr.f32.mxu0 %v954_v4  ;;  %v211_v7 = vld [vmem:[#allocation7 + $0x70] sm:$0xff]  ;;  %v210_v9 = vld [vmem:[#allocation7 + $0x68] sm:$0xff] }
  0x3f   :  { %594 = vmatprep.subr.mxu0 %v111_v1  ;;  %v212_v6 = vld [vmem:[#allocation7 + $0x78] sm:$0xff]  ;;  %v107_v8 = vld [vmem:[#allocation5 + $0x50] sm:$0xff]  ;;  %v106_v10 = vld [vmem:[#allocation5 + $0x48] sm:$0xff] }
  0x40   :  { %595 = vmatpush3.msra.mxu0 %v111_v1  ;;  %627 = vmatprep.subr.mxu1 %v212_v6  ;;  %v209_v11 = vld [vmem:[#allocation7 + $0x60] sm:$0xff]  ;;  %v208_v13 = vld [vmem:[#allocation7 + $0x58] sm:$0xff]  ;;  %v207_v15 = vld [vmem:[#allocation7 + $0x50] sm:$0xff] }
  0x41   :  { %596 = vmatprep.subr.mxu0 %v110_v2  ;;  %628 = vmatpush3.msra.mxu1 %v212_v6  ;;  %v105_v12 = vld [vmem:[#allocation5 + $0x40] sm:$0xff]  ;;  %v104_v14 = vld [vmem:[#allocation5 + $0x38] sm:$0xff]  ;;  %v103_v16 = vld [vmem:[#allocation5 + $0x30] sm:$0xff] }
  0x42   :  { %597 = vmatpush3.msra.mxu0 %v110_v2  ;;  %629 = vmatprep.subr.mxu1 %v211_v7  ;;  %v206_v17 = vld [vmem:[#allocation7 + $0x48] sm:$0xff]  ;;  %v205_v19 = vld [vmem:[#allocation7 + $0x40] sm:$0xff]  ;;  %v204_v21 = vld [vmem:[#allocation7 + $0x38] sm:$0xff] }
  0x43   :  { %598 = vmatprep.subr.mxu0 %v109_v3  ;;  %630 = vmatpush3.msra.mxu1 %v211_v7  ;;  %v102_v18 = vld [vmem:[#allocation5 + $0x28] sm:$0xff]  ;;  %v101_v20 = vld [vmem:[#allocation5 + $0x20] sm:$0xff]  ;;  %v100_v22 = vld [vmem:[#allocation5 + $0x18] sm:$0xff] }
  0x44   :  { %599 = vmatpush3.msra.mxu0 %v109_v3  ;;  %631 = vmatprep.subr.mxu1 %v210_v9  ;;  %v203_v23 = vld [vmem:[#allocation7 + $0x30] sm:$0xff]  ;;  %v202_v25 = vld [vmem:[#allocation7 + $0x28] sm:$0xff]  ;;  %v201_v27 = vld [vmem:[#allocation7 + $0x20] sm:$0xff] }
  0x45   :  { %600 = vmatprep.subr.mxu0 %v108_v5  ;;  %632 = vmatpush3.msra.mxu1 %v210_v9  ;;  %v99_v24 = vld [vmem:[#allocation5 + $0x10] sm:$0xff]  ;;  %v98_v26 = vld [vmem:[#allocation5 + $0x8] sm:$0xff]  ;;  %v97_v28 = vld [vmem:[#allocation5] sm:$0xff] }
  0x46   :  { %601 = vmatpush3.msra.mxu0 %v108_v5  ;;  %633 = vmatprep.subr.mxu1 %v209_v11  ;;  %v957_v29 = vld [vmem:[#allocation2 + $0x8] sm:$0xff]  ;;  %v199_v31 = vld [vmem:[#allocation7 + $0x10] sm:$0xff]  ;;  %v198_v32 = vld [vmem:[#allocation7 + $0x8] sm:$0xff] }
  0x47   :  { %602 = vmatprep.subr.mxu0 %v107_v8  ;;  %634 = vmatpush3.msra.mxu1 %v209_v11  ;;  %v200_v30 = vld [vmem:[#allocation7 + $0x18] sm:$0xff]  ;;  %v197_v33 = vld [vmem:[#allocation7] sm:$0xff]  ;;  %v518_v34 = vld [vmem:[%s984_s2] ss:$0 sm:$0xff]  ;;  %s883_s2 = smov [#allocation11]  }
  0x48   :  { %603 = vmatpush3.msra.mxu0 %v107_v8  ;;  %635 = vmatprep.subr.mxu1 %v208_v13  ;;  %v519_v42 = vld [vmem:[%s986_s4] ss:$0 sm:$0xff]  ;;  %v419_v46 = vld [vmem:[#allocation8 + $0x78] sm:$0xff]  ;;  %v417_v50 = vld [vmem:[#allocation8 + $0x68] sm:$0xff]  ;;  %s504_s4 = sshll.u32 %s883_s2, 4  ;;  %s505_s4 = int_to_ptr.vmem [resolvable:$true] %s504_s4 }
  0x49   :  { %604 = vmatprep.subr.mxu0 %v106_v10  ;;  %636 = vmatpush3.msra.mxu1 %v208_v13  ;;  %v328_v47 = vld [vmem:[#allocation10 + $0x78] sm:$0xff]  ;;  %v418_v48 = vld [vmem:[#allocation8 + $0x70] sm:$0xff]  ;;  %v326_v51 = vld [vmem:[#allocation10 + $0x68] sm:$0xff]  ;;  %s848_s27 = scalar_lea.vmem %s505_s4, 256  ;;  %p853_p12 = scmp.lt.s32.totalorder %s505_s4, %s505_s4 }
  0x4a   :  { %605 = vmatpush3.msra.mxu0 %v106_v10  ;;  %637 = vmatprep.subr.mxu1 %v207_v15  ;;  %v327_v49 = vld [vmem:[#allocation10 + $0x70] sm:$0xff]  ;;  %v416_v52 = vld [vmem:[#allocation8 + $0x60] sm:$0xff]  ;;  %v415_v54 = vld [vmem:[#allocation8 + $0x58] sm:$0xff]  ;;  %p849_p11 = scmp.ne.s32.totalorder %s505_s4, %s848_s27  ;;  %p854_p13 = scmp.lt.s32.totalorder %s848_s27, %s848_s27 }
  0x4b   :  { %606 = vmatprep.subr.mxu0 %v105_v12  ;;  %638 = vmatpush3.msra.mxu1 %v207_v15  ;;  %v325_v53 = vld [vmem:[#allocation10 + $0x60] sm:$0xff]  ;;  %v324_v55 = vld [vmem:[#allocation10 + $0x58] sm:$0xff]  ;;  %v414_v56 = vld [vmem:[#allocation8 + $0x50] sm:$0xff] }
  0x4c   :  { %607 = vmatpush3.msra.mxu0 %v105_v12  ;;  %639 = vmatprep.subr.mxu1 %v206_v17  ;;  %v323_v57 = vld [vmem:[#allocation10 + $0x50] sm:$0xff]  ;;  %v413_v58 = vld [vmem:[#allocation8 + $0x48] sm:$0xff]  ;;  %v321_v5 = vld [vmem:[#allocation10 + $0x40] sm:$0xff]  ;;  %p855_p0 = por %p854_p13, %p853_p12 }
  0x4d   :  { %608 = vmatprep.subr.mxu0 %v104_v14  ;;  %640 = vmatpush3.msra.mxu1 %v206_v17  ;;  %v322_v3 = vld [vmem:[#allocation10 + $0x48] sm:$0xff]  ;;  %v411_v6 = vld [vmem:[#allocation8 + $0x38] sm:$0xff]  ;;  %v410_v8 = vld [vmem:[#allocation8 + $0x30] sm:$0xff] }
  0x4e   :  { %609 = vmatpush3.msra.mxu0 %v104_v14  ;;  %641 = vmatprep.subr.mxu1 %v205_v19  ;;  %v320_v7 = vld [vmem:[#allocation10 + $0x38] sm:$0xff]  ;;  %v319_v9 = vld [vmem:[#allocation10 + $0x30] sm:$0xff]  ;;  %v409_v10 = vld [vmem:[#allocation8 + $0x28] sm:$0xff]  ;;  %p856_p1 = pnand %p855_p0, %p849_p11 }
  0x4f   :  { %610 = vmatprep.subr.mxu0 %v103_v16  ;;  %642 = vmatpush3.msra.mxu1 %v205_v19  ;;  %v318_v11 = vld [vmem:[#allocation10 + $0x28] sm:$0xff]  ;;  %v408_v12 = vld [vmem:[#allocation8 + $0x20] sm:$0xff]  ;;  %v407_v14 = vld [vmem:[#allocation8 + $0x18] sm:$0xff] }
  0x50   :  { %611 = vmatpush3.msra.mxu0 %v103_v16  ;;  %643 = vmatprep.subr.mxu1 %v204_v21  ;;  %v317_v13 = vld [vmem:[#allocation10 + $0x20] sm:$0xff]  ;;  %v316_v15 = vld [vmem:[#allocation10 + $0x18] sm:$0xff]  ;;  %v406_v16 = vld [vmem:[#allocation8 + $0x10] sm:$0xff] }
  0x51   :  { %612 = vmatprep.subr.mxu0 %v102_v18  ;;  %644 = vmatpush3.msra.mxu1 %v204_v21  ;;  %v315_v17 = vld [vmem:[#allocation10 + $0x10] sm:$0xff]  ;;  %v314_v19 = vld [vmem:[#allocation10 + $0x8] sm:$0xff]  ;;  %v313_v21 = vld [vmem:[#allocation10] sm:$0xff] }
  0x52   :  { %613 = vmatpush3.msra.mxu0 %v102_v18  ;;  %645 = vmatprep.subr.mxu1 %v203_v23  ;;  %v405_v18 = vld [vmem:[#allocation8 + $0x8] sm:$0xff] }
  0x53   :  { %614 = vmatprep.subr.mxu0 %v101_v20  ;;  %646 = vmatpush3.msra.mxu1 %v203_v23 }
  0x54   :  { %615 = vmatpush3.msra.mxu0 %v101_v20  ;;  %647 = vmatprep.subr.mxu1 %v202_v25  ;;  %v404_v20 = vld [vmem:[#allocation8] sm:$0xff] }
  0x55   :  { %616 = vmatprep.subr.mxu0 %v100_v22  ;;  %648 = vmatpush3.msra.mxu1 %v202_v25 }
  0x56   :  { %617 = vmatpush3.msra.mxu0 %v100_v22  ;;  %649 = vmatprep.subr.mxu1 %v201_v27 }
  0x57   :  { %618 = vmatprep.subr.mxu0 %v99_v24  ;;  %650 = vmatpush3.msra.mxu1 %v201_v27 }
  0x58   :  { %619 = vmatpush3.msra.mxu0 %v99_v24  ;;  %651 = vmatprep.subr.mxu1 %v200_v30 }
  0x59   :  { %620 = vmatprep.subr.mxu0 %v98_v26  ;;  %652 = vmatpush3.msra.mxu1 %v200_v30 }
  0x5a   :  { %621 = vmatpush3.msra.mxu0 %v98_v26  ;;  %653 = vmatprep.subr.mxu1 %v199_v31 }
  0x5b   :  { %622 = vmatprep.subr.mxu0 %v97_v28  ;;  %654 = vmatpush3.msra.mxu1 %v199_v31 }
  0x5c   :  { %623 = vmatpush3.msra.mxu0 %v97_v28  ;;  %655 = vmatprep.subr.mxu1 %v198_v32 }
  0x5d   :  { %625 = vmatmul.mubr.f32.vlgmr.msra.gmra.mxu0 %v957_v29  ;;  %656 = vmatpush3.msra.mxu1 %v198_v32 }
  0x5e   :  { %657 = vmatprep.subr.mxu1 %v197_v33  ;;  %662 = vmatprep.subr.mxu0 %v328_v47 }
  0x5f   :  { %658 = vmatpush3.msra.mxu1 %v197_v33  ;;  %663 = vmatpush3.msra.mxu0 %v328_v47 }
  0x60   :  { %697 = vmatprep.subr.mxu1 %v419_v46  ;;  %664 = vmatprep.subr.mxu0 %v327_v49 }
  0x61   :  { %665 = vmatpush3.msra.mxu0 %v327_v49 }
  0x62   :  { %666 = vmatprep.subr.mxu0 %v326_v51 }
  0x63   :  { %667 = vmatpush3.msra.mxu0 %v326_v51 }
  0x64   :  { %668 = vmatprep.subr.mxu0 %v325_v53 }
  0x65   :  { %669 = vmatpush3.msra.mxu0 %v325_v53 }
  0x66   :  { %670 = vmatprep.subr.mxu0 %v324_v55 }
  0x67   :  { %671 = vmatpush3.msra.mxu0 %v324_v55 }
  0x68   :  { %672 = vmatprep.subr.mxu0 %v323_v57 }
  0x69   :  { %673 = vmatpush3.msra.mxu0 %v323_v57 }
  0x6a   :  { %674 = vmatprep.subr.mxu0 %v322_v3 }
  0x6b   :  { %675 = vmatpush3.msra.mxu0 %v322_v3 }
  0x6c   :  { %676 = vmatprep.subr.mxu0 %v321_v5 }
  0x6d   :  { %677 = vmatpush3.msra.mxu0 %v321_v5 }
  0x6e   :  { %678 = vmatprep.subr.mxu0 %v320_v7 }
  0x6f   :  { %679 = vmatpush3.msra.mxu0 %v320_v7 }
  0x70   :  { %680 = vmatprep.subr.mxu0 %v319_v9 }
  0x71   :  { %681 = vmatpush3.msra.mxu0 %v319_v9 }
  0x72   :  { %682 = vmatprep.subr.mxu0 %v318_v11 }
  0x73   :  { %683 = vmatpush3.msra.mxu0 %v318_v11 }
  0x74   :  { %684 = vmatprep.subr.mxu0 %v317_v13 }
  0x75   :  { %685 = vmatpush3.msra.mxu0 %v317_v13 }
  0x76   :  { %686 = vmatprep.subr.mxu0 %v316_v15 }
  0x77   :  { %687 = vmatpush3.msra.mxu0 %v316_v15 }
  0x78   :  { %688 = vmatprep.subr.mxu0 %v315_v17 }
  0x79   :  { %689 = vmatpush3.msra.mxu0 %v315_v17 }
  0x7a   :  { %690 = vmatprep.subr.mxu0 %v314_v19 }
  0x7b   :  { %691 = vmatpush3.msra.mxu0 %v314_v19 }
  0x7c   :  { %692 = vmatprep.subr.mxu0 %v313_v21 }
  0x7d   :  { %693 = vmatpush3.msra.mxu0 %v313_v21 }
 0x11d   :  { %v626_v35 = vpop.f32.mrf.mxu0 }
 0x11e   :  { %v192_v36 = vadd.f32 %v626_v35, %v518_v34 }
 0x11f   :  { %v186_v37 = vpop.f32.mrf.mxu0 }
 0x120   :  { %v187_v38 = vadd.f32 %v518_v34, %v186_v37  ;;  %v196_v40 = vmax.f32 %v192_v36, 0.0 }
 0x122   :  { %v195_v39 = vmax.f32 %v187_v38, 0.0 }
 0x124   :  { %659 = vmatprep.mubr.f32.mxu1 %v195_v39 }
 0x125   :  { %660 = vmatmul.mubr.f32.vlgmr.msra.gmra.mxu1 %v196_v40 }
 0x126   :  { %729 = vmatprep.mubr.f32.mxu1 %v954_v4  ;;  %698 = vmatpush3.msra.mxu1 %v419_v46  ;;  %v412_v4 = vld [vmem:[#allocation8 + $0x40] sm:$0xff] }
 0x127   :  { %699 = vmatprep.subr.mxu1 %v418_v48 }
 0x128   :  { %700 = vmatpush3.msra.mxu1 %v418_v48 }
 0x129   :  { %701 = vmatprep.subr.mxu1 %v417_v50 }
 0x12a   :  { %702 = vmatpush3.msra.mxu1 %v417_v50 }
 0x12b   :  { %703 = vmatprep.subr.mxu1 %v416_v52 }
 0x12c   :  { %704 = vmatpush3.msra.mxu1 %v416_v52 }
 0x12d   :  { %705 = vmatprep.subr.mxu1 %v415_v54 }
 0x12e   :  { %706 = vmatpush3.msra.mxu1 %v415_v54 }
 0x12f   :  { %707 = vmatprep.subr.mxu1 %v414_v56 }
 0x130   :  { %708 = vmatpush3.msra.mxu1 %v414_v56 }
 0x131   :  { %709 = vmatprep.subr.mxu1 %v413_v58 }
 0x132   :  { %710 = vmatpush3.msra.mxu1 %v413_v58 }
 0x133   :  { %711 = vmatprep.subr.mxu1 %v412_v4 }
 0x134   :  { %712 = vmatpush3.msra.mxu1 %v412_v4 }
 0x135   :  { %713 = vmatprep.subr.mxu1 %v411_v6 }
 0x136   :  { %714 = vmatpush3.msra.mxu1 %v411_v6 }
 0x137   :  { %715 = vmatprep.subr.mxu1 %v410_v8 }
 0x138   :  { %716 = vmatpush3.msra.mxu1 %v410_v8 }
 0x139   :  { %717 = vmatprep.subr.mxu1 %v409_v10 }
 0x13a   :  { %718 = vmatpush3.msra.mxu1 %v409_v10 }
 0x13b   :  { %719 = vmatprep.subr.mxu1 %v408_v12 }
 0x13c   :  { %720 = vmatpush3.msra.mxu1 %v408_v12 }
 0x13d   :  { %721 = vmatprep.subr.mxu1 %v407_v14 }
 0x13e   :  { %722 = vmatpush3.msra.mxu1 %v407_v14 }
 0x13f   :  { %723 = vmatprep.subr.mxu1 %v406_v16 }
 0x140   :  { %724 = vmatpush3.msra.mxu1 %v406_v16 }
 0x141   :  { %725 = vmatprep.subr.mxu1 %v405_v18 }
 0x142   :  { %726 = vmatpush3.msra.mxu1 %v405_v18 }
 0x143   :  { %727 = vmatprep.subr.mxu1 %v404_v20 }
 0x144   :  { %728 = vmatpush3.msra.mxu1 %v404_v20 }
 0x145   :  { %730 = vmatmul.mubr.f32.vlgmr.msra.gmra.mxu1 %v957_v29 }
 0x1e5   :  { %v661_v41 = vpop.f32.mrf.mxu1 }
 0x1e6   :  { %v292_v45 = vadd.f32 %v661_v41, %v519_v42 }
 0x1e7   :  { %v286_v43 = vpop.f32.mrf.mxu1 }
 0x1e8   :  { %v287_v44 = vadd.f32 %v519_v42, %v286_v43 }
 0x1ea   :  { %295 = vmax.xlane.f32.xlu0 %v287_v44 }
 0x1ee   :  { %297 = vmax.xlane.f32.xlu0 %v292_v45 }
 0x205   :  { %v731_v28 = vpop.f32.mrf.mxu1 }
 0x207   :  { %v486_v32 = vpop.f32.mrf.mxu1 }
 0x273   :  { %v296_v59 = vpop.xlane.xlu0 %295 }
 0x274   :  { %v299_v60 = vsub.f32 %v287_v44, %v296_v59 }
 0x276   :  { %v301_v61 = vmul.f32 1.442695, %v299_v60 }
 0x277   :  { %v298_v62 = vpop.xlane.xlu0 %297 }
 0x278   :  { %740 = vpow2.f32 %v301_v61  ;;  %v300_v63 = vsub.f32 %v292_v45, %v298_v62 }
 0x27a   :  { %v303_v0 = vmul.f32 1.442695, %v300_v63 }
 0x27c   :  { %742 = vpow2.f32 %v303_v0 }
 0x285   :  { %v967_v1 = vpop.eup %740 }
 0x286   :  { %305 = vadd.xlane.f32.xlu1 %v967_v1 }
 0x289   :  { %v970_v2 = vpop.eup %742 }
 0x28a   :  { %307 = vadd.xlane.f32.xlu1 %v970_v2 }
 0x30f   :  { %v306_v22 = vpop.xlane.xlu1 %305 }
 0x310   :  { %744 = vrcp.f32 %v306_v22 }
 0x313   :  { %v308_v23 = vpop.xlane.xlu1 %307 }
 0x314   :  { %746 = vrcp.f32 %v308_v23 }
 0x31d   :  { %v745_v24 = vpop.eup %744 }
 0x31e   :  { %v311_v25 = vmul.f32 %v745_v24, %v967_v1 }
 0x320   :  { %694 = vmatprep.mubr.f32.mxu0 %v311_v25 }
 0x321   :  { %v747_v26 = vpop.eup %746 }
 0x322   :  { %v312_v27 = vmul.f32 %v747_v26, %v970_v2 }
 0x324   :  { %695 = vmatmul.mubr.f32.vlgmr.msra.gmra.mxu0 %v312_v27 }
 0x3e4   :  { %v696_v30 = vpop.f32.mrf.mxu0 }
 0x3e5   :  { %v496_v31 = vmul.f32 %v731_v28, %v696_v30 }
 0x3e6   :  { %v395_v29 = vpop.f32.mrf.mxu0 }
 0x3e7   :  { %498 = vst [vmem:[#allocation11 + $0x8] sm:$0xff] %v496_v31  ;;  %v495_v33 = vmul.f32 %v486_v32, %v395_v29 }
 0x3e9   :  { %497 = vst [vmem:[#allocation11] sm:$0xff] %v495_v33 }
 0x3ea   :  { %859 = shalt.err (!%p856_p1)
}
 0x3eb   :  { %510 = dma.vmem_to_hbm [thread:$0]  %s505_s4, 256, %s989_s7, [#allocation4], %s878_s29, %s878_s29, %s879_s30  }
 0x3ec   :  { %874 = dma.done.wait [#allocation4], 256  }
 0x3ed   :  { %875 = vsyncadd [#allocation4], 4294967040 }
 0x3ee   :  { %514 = vsyncpa [#allocation3], 1 }
 0x3ef   :  { %515 = vsyncpa [#allocation6], 1 }
 0x3f0   :  { %516 = vsyncpa [#allocation9], 1 }
 0x3f1   :  { %517 = vsyncpa [#allocation4], 1 }

</bundles_post_ra>
